<compile_context>
chip_gen: v6e
topology: v6e:2x2x1
jax: 0.10.0
libtpu: 0.0.40
codegen_flags: <defaults>
</compile_context>

<pallas_src>
import jax
import jax.numpy as jnp
from jax.experimental import pallas as pl
from jax.experimental.pallas import tpu as pltpu


_NEG_BIG = -1e30  # finite "minus infinity" for the baked-in class mask


def _rup8(n):
    return ((n + 7) // 8) * 8


# --------------------------------------------------------------------------
# Host-side, once-per-weight-set: fold normalization + pack one param slab.
# --------------------------------------------------------------------------
def pack_params(mean, std, w0, b0, w1, b1, w2, b2):
    """Fold (x-mean)/std into layer 0 and pack all params into one f32 slab.

    Slab layout (all zero-padded to `width` lanes):
      rows [0, n_var)       : W0' = diag(1/std) @ W0          (n_var, width)
      rows [s1, s1+width)   : W1                              (width, width)
      rows [s2, s2+width)   : W2                              (width, width)
      row  s3               : b0' = b0 - (mean/std) @ W0
      row  s3 + 1           : b1
      row  s3 + 2           : b2   (padded lanes set to -1e30 -> class mask)
    Zero padding propagates exactly (padded hidden lanes stay 0 through ReLU),
    so results match the unpadded network.
    """
    n_var, h0 = w0.shape
    h1 = w1.shape[1]
    n_out = w2.shape[1]
    width = max(h0, h1, n_out)

    mean = jnp.asarray(mean, jnp.float32).reshape(1, n_var)
    inv_std = 1.0 / jnp.asarray(std, jnp.float32).reshape(1, n_var)
    w0 = jnp.asarray(w0, jnp.float32)
    w0f = w0 * inv_std.reshape(n_var, 1)
    b0f = jnp.asarray(b0, jnp.float32).reshape(1, h0) - (mean * inv_std) @ w0

    s1 = _rup8(n_var)
    s2 = s1 + _rup8(width)
    s3 = s2 + _rup8(width)
    total_rows = s3 + 8  # 3 bias rows, rounded up to a multiple of 8

    params = jnp.zeros((total_rows, width), jnp.float32)
    params = params.at[0:n_var, 0:h0].set(w0f)
    params = params.at[s1:s1 + h0, 0:h1].set(jnp.asarray(w1, jnp.float32))
    params = params.at[s2:s2 + h1, 0:n_out].set(jnp.asarray(w2, jnp.float32))
    params = params.at[s3 + 0, 0:h0].set(b0f.reshape(h0))
    params = params.at[s3 + 1, 0:h1].set(jnp.asarray(b1, jnp.float32).reshape(h1))
    params = params.at[s3 + 2, 0:n_out].set(jnp.asarray(b2, jnp.float32).reshape(n_out))
    if n_out < width:
        # Bake the class mask into the padded lanes of the output bias:
        # zero-padded W2 columns give logit 0 there; -1e30 pushes exp() to 0.
        params = params.at[s3 + 2, n_out:width].set(_NEG_BIG)

    meta = dict(n_var=n_var, width=width, n_out=n_out, s1=s1, s2=s2, s3=s3)
    return params, meta


# --------------------------------------------------------------------------
# Kernel: one batch tile through (folded-norm) MLP + softmax.
# --------------------------------------------------------------------------
def make_mlp_kernel(n_var, width, n_out, s1, s2, s3):
    def kernel(x_ref, params_ref, out_ref):
        x = x_ref[...]                                   # (tile_b, n_var)

        # Static ref slices: zero runtime cost, one resident param slab.
        w0 = params_ref[0:n_var, :]                      # (n_var, width)
        w1 = params_ref[s1:s1 + width, :]                # (width, width)
        w2 = params_ref[s2:s2 + width, :]                # (width, width)
        b0 = params_ref[s3 + 0:s3 + 1, :]                # (1, width)
        b1 = params_ref[s3 + 1:s3 + 2, :]
        b2 = params_ref[s3 + 2:s3 + 3, :]                # padded lanes = -1e30

        # Hidden layer 0 (normalization already folded into w0/b0) + ReLU.
        h = jnp.dot(x, w0, preferred_element_type=jnp.float32) + b0
        h = jnp.maximum(h, 0.0)
        # Hidden layer 1 + ReLU.
        h = jnp.dot(h, w1, preferred_element_type=jnp.float32) + b1
        h = jnp.maximum(h, 0.0)
        # Output layer; padded classes get logit -1e30 from the bias row.
        logits = jnp.dot(h, w2, preferred_element_type=jnp.float32) + b2

        # Softmax(dim=1). Exact divide so each row sums to 1 (f32 precision).
        m = jnp.max(logits, axis=-1, keepdims=True)
        e = jnp.exp(logits - m)                          # padded lanes -> 0
        denom = jnp.sum(e, axis=-1, keepdims=True)
        probs = e / denom
        out_ref[...] = probs[:, :n_out]

    return kernel


# --------------------------------------------------------------------------
# Wrapper: grid over the batch; param slab held resident across grid steps.
# --------------------------------------------------------------------------
def torch_nn_forward(x, packed_params, meta, *, tile_b=None):
    x = jnp.asarray(x, jnp.float32)
    B, n_var = x.shape
    assert n_var == meta["n_var"]
    width, n_out = meta["width"], meta["n_out"]
    s1, s2, s3 = meta["s1"], meta["s2"], meta["s3"]
    total_rows = packed_params.shape[0]

    if tile_b is None:
        if B <= 1024:
            # Tiny batch: one tile; splitting across cores costs more than it saves.
            tile_b = _rup8(B)
        else:
            # Big tiles amortize the ~0.35 us per-grid-step overhead; keep >= 2
            # tiles so the "parallel" batch axis feeds both v7x TensorCores.
            tile_b = min(2048, _rup8(pl.cdiv(B, 2)))
    tile_b = max(8, min(tile_b, _rup8(B)))

    Bp = pl.cdiv(B, tile_b) * tile_b
    xp = x if Bp == B else jnp.pad(x, ((0, Bp - B), (0, 0)))

    kernel = make_mlp_kernel(n_var, width, n_out, s1, s2, s3)

    out = pl.pallas_call(
        kernel,
        out_shape=jax.ShapeDtypeStruct((Bp, n_out), jnp.float32),
        grid=(Bp // tile_b,),
        in_specs=[
            pl.BlockSpec((tile_b, n_var), lambda i: (i, 0)),
            pl.BlockSpec((total_rows, width), lambda i: (0, 0)),  # resident params
        ],
        out_specs=pl.BlockSpec((tile_b, n_out), lambda i: (i, 0)),
        compiler_params=pltpu.CompilerParams(
            dimension_semantics=("parallel",),  # megacore shards batch tiles
        ),
    )(xp, packed_params)
    return out[:B]


def reference_forward(x, mean, std, w0, b0, w1, b1, w2, b2):
    """Pure-JAX equivalent of torch_NN.forward (f32)."""
    xn = (x - mean) / std
    h = jnp.maximum(xn @ w0 + b0, 0.0)
    h = jnp.maximum(h @ w1 + b1, 0.0)
    return jax.nn.softmax(h @ w2 + b2, axis=-1)


if __name__ == "__main__":
    B = 250        # not a multiple of 8 -> exercises the batch-padding path
    N_VAR = 16     # input features
    H0, H1 = 32, 32
    N_CLASSES = 4  # 'cce' -> softmax output of size n_classes

    key = jax.random.PRNGKey(0)
    ks = jax.random.split(key, 9)

    x = jax.random.normal(ks[0], (B, N_VAR), dtype=jnp.float32)

    # stat_values: per-feature mean/std (std kept away from zero)
    mean = jax.random.normal(ks[1], (1, N_VAR), dtype=jnp.float32)
    std = jax.random.uniform(ks[2], (1, N_VAR), dtype=jnp.float32,
                             minval=0.5, maxval=1.5)

    def linear_init(kw, kb, fan_in, fan_out):
        bound = 1.0 / jnp.sqrt(jnp.float32(fan_in))
        w = jax.random.uniform(kw, (fan_in, fan_out), jnp.float32, -bound, bound)
        b = jax.random.uniform(kb, (1, fan_out), jnp.float32, -bound, bound)
        return w, b

    w0, b0 = linear_init(ks[3], ks[4], N_VAR, H0)
    w1, b1 = linear_init(ks[5], ks[6], H0, H1)
    w2, b2 = linear_init(ks[7], ks[8], H1, N_CLASSES)

    # Pack once per weight set (host side), reuse across calls.
    params, meta = pack_params(mean, std, w0, b0, w1, b1, w2, b2)
    ref = reference_forward(x, mean, std, w0, b0, w1, b1, w2, b2)

    # Default tiling: single tile covering the (small) batch.
    out = jax.block_until_ready(torch_nn_forward(x, params, meta))
    assert out.shape == (B, N_CLASSES)
    assert jnp.allclose(jnp.sum(out, axis=-1), 1.0, atol=1e-4)
    assert jnp.allclose(out, ref, atol=1e-4, rtol=1e-4)

    # Forced small tile: exercises the multi-step grid + resident param slab.
    out2 = jax.block_until_ready(torch_nn_forward(x, params, meta, tile_b=64))
    assert jnp.allclose(out2, ref, atol=1e-4, rtol=1e-4)

    print("KERNEL_OK")
</pallas_src>

<mosaic_0001>
module attributes {stable_mosaic.version = 11 : i64} {
  func.func @kernel(%arg0: i32, %arg1: memref<256x16xf32, #tpu.memory_space<vmem>>, %arg2: memref<88x32xf32, #tpu.memory_space<vmem>>, %arg3: memref<256x4xf32, #tpu.memory_space<vmem>>) attributes {dimension_semantics = [#tpu.dimension_semantics<parallel>], iteration_bounds = array<i64: 1>, scalar_prefetch = 0 : i64, scratch_operands = 0 : i64, tpu.core_type = #tpu.core_type<tc>, window_params = [{transform_indices = @transform_0, window_bounds = array<i64: 256, 16>}, {pipeline_mode = #tpu.pipeline_mode<synchronous>, transform_indices = @transform_1, window_bounds = array<i64: 88, 32>}, {transform_indices = @transform_2, window_bounds = array<i64: 256, 4>}]} {
    %c0 = arith.constant 0 : index
    %c0_0 = arith.constant 0 : index
    %0 = vector.load %arg1[%c0, %c0_0] : memref<256x16xf32, #tpu.memory_space<vmem>>, vector<256x16xf32>
    %c0_1 = arith.constant 0 : index
    %c0_2 = arith.constant 0 : index
    %1 = vector.load %arg2[%c0_1, %c0_2] : memref<88x32xf32, #tpu.memory_space<vmem>>, vector<16x32xf32>
    %c16 = arith.constant 16 : index
    %c0_3 = arith.constant 0 : index
    %2 = vector.load %arg2[%c16, %c0_3] : memref<88x32xf32, #tpu.memory_space<vmem>>, vector<32x32xf32>
    %c48 = arith.constant 48 : index
    %c0_4 = arith.constant 0 : index
    %3 = vector.load %arg2[%c48, %c0_4] : memref<88x32xf32, #tpu.memory_space<vmem>>, vector<32x32xf32>
    %c80 = arith.constant 80 : index
    %c0_5 = arith.constant 0 : index
    %4 = vector.load %arg2[%c80, %c0_5] : memref<88x32xf32, #tpu.memory_space<vmem>>, vector<1x32xf32>
    %c81 = arith.constant 81 : index
    %c0_6 = arith.constant 0 : index
    %5 = vector.load %arg2[%c81, %c0_6] : memref<88x32xf32, #tpu.memory_space<vmem>>, vector<1x32xf32>
    %c82 = arith.constant 82 : index
    %c0_7 = arith.constant 0 : index
    %6 = vector.load %arg2[%c82, %c0_7] : memref<88x32xf32, #tpu.memory_space<vmem>>, vector<1x32xf32>
    %cst = arith.constant dense<0.000000e+00> : vector<256x32xf32>
    %7 = tpu.matmul %0, %1, %cst {dimension_numbers = #tpu.dot_dimension_numbers<[1], [0], [0], [1], [0, 0, 1, 1], [], []>} : vector<256x16xf32>, vector<16x32xf32>, vector<256x32xf32> -> vector<256x32xf32>
    %8 = vector.broadcast %4 : vector<1x32xf32> to vector<256x32xf32>
    %9 = arith.addf %7, %8 : vector<256x32xf32>
    %cst_8 = arith.constant 0.000000e+00 : f32
    %10 = vector.broadcast %cst_8 : f32 to vector<256x32xf32>
    %11 = arith.maximumf %9, %10 : vector<256x32xf32>
    %cst_9 = arith.constant dense<0.000000e+00> : vector<256x32xf32>
    %12 = tpu.matmul %11, %2, %cst_9 {dimension_numbers = #tpu.dot_dimension_numbers<[1], [0], [0], [1], [0, 0, 1, 1], [], []>} : vector<256x32xf32>, vector<32x32xf32>, vector<256x32xf32> -> vector<256x32xf32>
    %13 = vector.broadcast %5 : vector<1x32xf32> to vector<256x32xf32>
    %14 = arith.addf %12, %13 : vector<256x32xf32>
    %cst_10 = arith.constant 0.000000e+00 : f32
    %15 = vector.broadcast %cst_10 : f32 to vector<256x32xf32>
    %16 = arith.maximumf %14, %15 : vector<256x32xf32>
    %cst_11 = arith.constant dense<0.000000e+00> : vector<256x32xf32>
    %17 = tpu.matmul %16, %3, %cst_11 {dimension_numbers = #tpu.dot_dimension_numbers<[1], [0], [0], [1], [0, 0, 1, 1], [], []>} : vector<256x32xf32>, vector<32x32xf32>, vector<256x32xf32> -> vector<256x32xf32>
    %18 = vector.broadcast %6 : vector<1x32xf32> to vector<256x32xf32>
    %19 = arith.addf %17, %18 : vector<256x32xf32>
    %cst_12 = arith.constant dense<0xFF800000> : vector<256xf32>
    %20 = vector.multi_reduction <maximumf>, %19, %cst_12 [1] : vector<256x32xf32> to vector<256xf32>
    %21 = vector.shape_cast %20 : vector<256xf32> to vector<256x1xf32>
    %22 = vector.broadcast %21 : vector<256x1xf32> to vector<256x32xf32>
    %23 = arith.subf %19, %22 : vector<256x32xf32>
    %24 = math.exp %23 : vector<256x32xf32>
    %cst_13 = arith.constant dense<0.000000e+00> : vector<256xf32>
    %25 = vector.multi_reduction <add>, %24, %cst_13 [1] : vector<256x32xf32> to vector<256xf32>
    %26 = vector.shape_cast %25 : vector<256xf32> to vector<256x1xf32>
    %27 = vector.broadcast %26 : vector<256x1xf32> to vector<256x32xf32>
    %28 = arith.divf %24, %27 : vector<256x32xf32>
    %29 = vector.extract_strided_slice %28 {offsets = [0, 0], sizes = [256, 4], strides = [1, 1]} : vector<256x32xf32> to vector<256x4xf32>
    %c0_14 = arith.constant 0 : index
    %c0_15 = arith.constant 0 : index
    %30 = vector.load %arg3[%c0_14, %c0_15] : memref<256x4xf32, #tpu.memory_space<vmem>>, vector<256x4xf32>
    tpu.vector_store %arg3[%c0_14, %c0_15], %29 {strides = array<i32>} : memref<256x4xf32, #tpu.memory_space<vmem>>, vector<256x4xf32>,
    return
  }
  func.func @transform_0(%arg0: i32) -> (i32, i32) {
    %c0_i32 = arith.constant 0 : i32
    %c0_i32_0 = arith.constant 0 : i32
    return %arg0, %c0_i32 : i32, i32
  }
  func.func @transform_1(%arg0: i32) -> (i32, i32) {
    %c0_i32 = arith.constant 0 : i32
    %c0_i32_0 = arith.constant 0 : i32
    %c0_i32_1 = arith.constant 0 : i32
    return %c0_i32, %c0_i32_0 : i32, i32
  }
  func.func @transform_2(%arg0: i32) -> (i32, i32) {
    %c0_i32 = arith.constant 0 : i32
    %c0_i32_0 = arith.constant 0 : i32
    return %arg0, %c0_i32 : i32, i32
  }
}

</mosaic_0001>

<bundles_post_ra>
// kernel: tpu_custom_call.1
= control target key start
LH: loop header
LB: loop body
LE: loop exit
PB: predicated region body
PF: predicated region fallthrough
CT: control target
= control target key end

     0   :  { %vm60_vm0 = vcmask 130048   ;;  %vm418_vm1 = vcmask 261120   ;;  %vm1449_vm2 = vcmask 31744   ;;  %s2789_s1 = inlined_call_operand.vmem [shape: f32[88,32], index: 1, kind: input, shape index: {}]   ;;  %s2790_s0 = inlined_call_operand.vmem [shape: f32[256,16], index: 0, kind: input, shape index: {}]   ;;  %s2791_s2 = inlined_call_operand.vmem [shape: f32[256,4], index: 2, kind: output, shape index: {}]  }
   0x1   :  { %v44_v0 = vld [vmem:[%s2789_s1 + $0x8] sm:$0xff]  ;;  %v43_v1 = vld [vmem:[%s2789_s1] sm:$0xff]  ;;  %v13_v4 = vld [vmem:[%s2790_s0 + $0x10] sm:$0xff] }
   0x2   :  { %1691 = vmatprep.subr.mxu0 %v44_v0  ;;  %v11_v2 = vld [vmem:[%s2790_s0] sm:$0xff]  ;;  %1855 = vmatprep.subr.mxu1 %v44_v0  ;;  %v12_v3 = vld [vmem:[%s2790_s0 + $0x8] sm:$0xff]  ;;  %v14_v5 = vld [vmem:[%s2790_s0 + $0x18] sm:$0xff] }
   0x3   :  { %1692 = vmatpush3.msra.mxu0 %v44_v0  ;;  %1695 = vmatprep.mubr.msk.f32.mxu0 %vm60_vm0, %v11_v2  ;;  %v15_v6 = vld [vmem:[%s2790_s0 + $0x20] sm:$0xff]  ;;  %v28_v8 = vld [vmem:[%s2790_s0 + $0x88] sm:$0xff]  ;;  %v29_v9 = vld [vmem:[%s2790_s0 + $0x90] sm:$0xff] }
   0x4   :  { %1693 = vmatprep.subr.mxu0 %v43_v1  ;;  %1857 = vmatpush3.msra.mxu1 %v44_v0  ;;  %v27_v7 = vld [vmem:[%s2790_s0 + $0x80] sm:$0xff]  ;;  %v16_v10 = vld [vmem:[%s2790_s0 + $0x28] sm:$0xff]  ;;  %v30_v11 = vld [vmem:[%s2790_s0 + $0x98] sm:$0xff] }
   0x5   :  { %1694 = vmatpush3.msra.mxu0 %v43_v1  ;;  %1856 = vmatprep.subr.mxu1 %v43_v1  ;;  %v17_v12 = vld [vmem:[%s2790_s0 + $0x30] sm:$0xff]  ;;  %v31_v13 = vld [vmem:[%s2790_s0 + $0xa0] sm:$0xff]  ;;  %v48_v14 = vld [vmem:[%s2789_s1 + $0x28] sm:$0xff] }
   0x6   :  { %1696 = vmatmul.mubr.msk.f32.vlgmr.msra.gmra.mxu0 %vm60_vm0, %v12_v3  ;;  %1858 = vmatpush3.msra.mxu1 %v43_v1  ;;  %v18_v15 = vld [vmem:[%s2790_s0 + $0x38] sm:$0xff]  ;;  %v32_v16 = vld [vmem:[%s2790_s0 + $0xa8] sm:$0xff]  ;;  %v19_v17 = vld [vmem:[%s2790_s0 + $0x40] sm:$0xff] }
   0x7   :  { %1698 = vmatprep.mubr.msk.f32.mxu0 %vm60_vm0, %v13_v4  ;;  %1719 = vmatprep.mubr.msk.f32.mxu1 %vm60_vm0, %v27_v7  ;;  %v33_v18 = vld [vmem:[%s2790_s0 + $0xb0] sm:$0xff]  ;;  %v47_v19 = vld [vmem:[%s2789_s1 + $0x20] sm:$0xff]  ;;  %v20_v20 = vld [vmem:[%s2790_s0 + $0x48] sm:$0xff] }
   0x8   :  { %1720 = vmatmul.mubr.msk.f32.vlgmr.msra.gmra.mxu1 %vm60_vm0, %v28_v8  ;;  %1743 = vmatprep.subr.mxu1 %v48_v14  ;;  %v34_v21 = vld [vmem:[%s2790_s0 + $0xb8] sm:$0xff]  ;;  %v21_v22 = vld [vmem:[%s2790_s0 + $0x50] sm:$0xff]  ;;  %v35_v23 = vld [vmem:[%s2790_s0 + $0xc0] sm:$0xff] }
   0x9   :  { %1722 = vmatprep.mubr.msk.f32.mxu1 %vm60_vm0, %v29_v9  ;;  %1744 = vmatpush3.msra.mxu1 %v48_v14  ;;  %v46_v24 = vld [vmem:[%s2789_s1 + $0x18] sm:$0xff]  ;;  %v36_v26 = vld [vmem:[%s2790_s0 + $0xc8] sm:$0xff]  ;;  %v23_v27 = vld [vmem:[%s2790_s0 + $0x60] sm:$0xff] }
   0xa   :  { %1699 = vmatmul.mubr.msk.f32.gmra.mxu0 %vm60_vm0, %v14_v5  ;;  %1745 = vmatprep.subr.mxu1 %v47_v19  ;;  %v22_v25 = vld [vmem:[%s2790_s0 + $0x58] sm:$0xff]  ;;  %v37_v28 = vld [vmem:[%s2790_s0 + $0xd0] sm:$0xff]  ;;  %v24_v30 = vld [vmem:[%s2790_s0 + $0x68] sm:$0xff] }
   0xb   :  { %1701 = vmatprep.mubr.msk.f32.mxu0 %vm60_vm0, %v15_v6  ;;  %1746 = vmatpush3.msra.mxu1 %v47_v19  ;;  %v45_v29 = vld [vmem:[%s2789_s1 + $0x10] sm:$0xff]  ;;  %v38_v31 = vld [vmem:[%s2790_s0 + $0xd8] sm:$0xff]  ;;  %v39_v33 = vld [vmem:[%s2790_s0 + $0xe0] sm:$0xff] }
   0xc   :  { %1723 = vmatmul.mubr.msk.f32.gmra.mxu1 %vm60_vm0, %v30_v11  ;;  %1747 = vmatprep.subr.mxu1 %v46_v24  ;;  %v25_v32 = vld [vmem:[%s2790_s0 + $0x70] sm:$0xff]  ;;  %v26_v34 = vld [vmem:[%s2790_s0 + $0x78] sm:$0xff]  ;;  %v40_v35 = vld [vmem:[%s2790_s0 + $0xe8] sm:$0xff] }
   0xd   :  { %1725 = vmatprep.mubr.msk.f32.mxu1 %vm60_vm0, %v31_v13  ;;  %1748 = vmatpush3.msra.mxu1 %v46_v24  ;;  %v41_v36 = vld [vmem:[%s2790_s0 + $0xf0] sm:$0xff]  ;;  %v42_v37 = vld [vmem:[%s2790_s0 + $0xf8] sm:$0xff]  ;;  %v52_v38 = vld [vmem:[%s2789_s1 + $0x48] sm:$0xff] }
   0xe   :  { %1702 = vmatmul.mubr.msk.f32.gmra.mxu0 %vm60_vm0, %v16_v10  ;;  %1749 = vmatprep.subr.mxu1 %v45_v29  ;;  %v51_v39 = vld [vmem:[%s2789_s1 + $0x40] sm:$0xff]  ;;  %v50_v40 = vld [vmem:[%s2789_s1 + $0x38] sm:$0xff]  ;;  %v49_v41 = vld [vmem:[%s2789_s1 + $0x30] sm:$0xff] }
   0xf   :  { %1704 = vmatprep.mubr.msk.f32.mxu0 %vm60_vm0, %v17_v12  ;;  %1750 = vmatpush3.msra.mxu1 %v45_v29  ;;  %v2163_v42 = vld [vmem:[%s2789_s1 + $0x50] ss:$0 sm:$0xff] }
  0x10   :  { %1726 = vmatmul.mubr.msk.f32.gmra.mxu1 %vm60_vm0, %v32_v16  ;;  %1799 = vmatprep.subr.mxu0 %v52_v38 }
  0x11   :  { %1728 = vmatprep.mubr.msk.f32.mxu1 %vm60_vm0, %v33_v18  ;;  %1800 = vmatpush3.msra.mxu0 %v52_v38 }
  0x12   :  { %1705 = vmatmul.mubr.msk.f32.gmra.mxu0 %vm60_vm0, %v18_v15  ;;  %1801 = vmatprep.subr.mxu0 %v51_v39 }
  0x13   :  { %1707 = vmatprep.mubr.msk.f32.mxu0 %vm60_vm0, %v19_v17  ;;  %1802 = vmatpush3.msra.mxu0 %v51_v39 }
  0x14   :  { %1729 = vmatmul.mubr.msk.f32.gmra.mxu1 %vm60_vm0, %v34_v21  ;;  %1803 = vmatprep.subr.mxu0 %v50_v40 }
  0x15   :  { %1731 = vmatprep.mubr.msk.f32.mxu1 %vm60_vm0, %v35_v23  ;;  %1804 = vmatpush3.msra.mxu0 %v50_v40 }
  0x16   :  { %1708 = vmatmul.mubr.msk.f32.gmra.mxu0 %vm60_vm0, %v20_v20  ;;  %1805 = vmatprep.subr.mxu0 %v49_v41 }
  0x17   :  { %1710 = vmatprep.mubr.msk.f32.mxu0 %vm60_vm0, %v21_v22  ;;  %1806 = vmatpush3.msra.mxu0 %v49_v41 }
  0x18   :  { %1732 = vmatmul.mubr.msk.f32.gmra.mxu1 %vm60_vm0, %v36_v26 }
  0x19   :  { %1734 = vmatprep.mubr.msk.f32.mxu1 %vm60_vm0, %v37_v28 }
  0x1a   :  { %1711 = vmatmul.mubr.msk.f32.gmra.mxu0 %vm60_vm0, %v22_v25 }
  0x1b   :  { %1713 = vmatprep.mubr.msk.f32.mxu0 %vm60_vm0, %v23_v27 }
  0x1c   :  { %1735 = vmatmul.mubr.msk.f32.gmra.mxu1 %vm60_vm0, %v38_v31 }
  0x1d   :  { %1737 = vmatprep.mubr.msk.f32.mxu1 %vm60_vm0, %v39_v33 }
  0x1e   :  { %1714 = vmatmul.mubr.msk.f32.gmra.mxu0 %vm60_vm0, %v24_v30 }
  0x1f   :  { %1716 = vmatprep.mubr.msk.f32.mxu0 %vm60_vm0, %v25_v32 }
  0x20   :  { %1738 = vmatmul.mubr.msk.f32.gmra.mxu1 %vm60_vm0, %v40_v35 }
  0x21   :  { %1740 = vmatprep.mubr.msk.f32.mxu1 %vm60_vm0, %v41_v36 }
  0x22   :  { %1717 = vmatmul.mubr.msk.f32.gmra.mxu0 %vm60_vm0, %v26_v34 }
  0x24   :  { %1741 = vmatmul.mubr.msk.f32.gmra.mxu1 %vm60_vm0, %v42_v37 }
  0xc6   :  { %v1697_v43 = vpop.f32.mrf.mxu0 }
  0xc7   :  { %v229_v44 = vadd.f32 %v1697_v43, %v2163_v42 }
  0xc8   :  { %v223_v45 = vpop.f32.mrf.mxu0  ;;  %v2167_v48 = vpop.f32.mrf.mxu1 }
  0xc9   :  { %v224_v46 = vadd.f32 %v2163_v42, %v223_v45  ;;  %v383_v50 = vmax.f32 %v229_v44, 0.0  ;;  %v309_v37 = vadd.f32 %v2167_v48, %v2163_v42 }
  0xca   :  { %v1700_v47 = vpop.f32.mrf.mxu0  ;;  %v303_v53 = vpop.f32.mrf.mxu1 }
  0xcb   :  { %v382_v49 = vmax.f32 %v224_v46, 0.0  ;;  %v239_v51 = vadd.f32 %v1700_v47, %v2163_v42  ;;  %v304_v32 = vadd.f32 %v2163_v42, %v303_v53  ;;  %v399_v43 = vmax.f32 %v309_v37, 0.0 }
  0xcc   :  { %v233_v52 = vpop.f32.mrf.mxu0  ;;  %v2173_v56 = vpop.f32.mrf.mxu1 }
  0xcd   :  { %v234_v54 = vadd.f32 %v2163_v42, %v233_v52  ;;  %1751 = vmatprep.mubr.msk.f32.mxu1 %vm418_vm1, %v382_v49  ;;  %v385_v59 = vmax.f32 %v239_v51, 0.0  ;;  %v398_v39 = vmax.f32 %v304_v32, 0.0  ;;  %v319_v44 = vadd.f32 %v2173_v56, %v2163_v42 }
  0xce   :  { %v1703_v55 = vpop.f32.mrf.mxu0  ;;  %1752 = vmatmul.mubr.msk.f32.vlgmr.msra.gmra.mxu1 %vm418_vm1, %v383_v50  ;;  %v313_v61 = vpop.f32.mrf.mxu1 }
  0xcf   :  { %v384_v57 = vmax.f32 %v234_v54, 0.0  ;;  %v249_v58 = vadd.f32 %v1703_v55, %v2163_v42  ;;  %v314_v40 = vadd.f32 %v2163_v42, %v313_v61  ;;  %v401_v48 = vmax.f32 %v319_v44, 0.0 }
  0xd0   :  { %v243_v60 = vpop.f32.mrf.mxu0  ;;  %v1727_v1 = vpop.f32.mrf.mxu1 }
  0xd1   :  { %v244_v62 = vadd.f32 %v2163_v42, %v243_v60  ;;  %1754 = vmatprep.mubr.msk.f32.mxu1 %vm418_vm1, %v384_v57  ;;  %v387_v63 = vmax.f32 %v249_v58, 0.0  ;;  %v400_v45 = vmax.f32 %v314_v40, 0.0  ;;  %v329_v49 = vadd.f32 %v1727_v1, %v2163_v42 }
  0xd2   :  { %v1706_v0 = vpop.f32.mrf.mxu0  ;;  %1755 = vmatmul.mubr.msk.f32.gmra.mxu1 %vm418_vm1, %v385_v59  ;;  %v323_v5 = vpop.f32.mrf.mxu1 }
  0xd3   :  { %v386_v2 = vmax.f32 %v244_v62, 0.0  ;;  %v259_v3 = vadd.f32 %v1706_v0, %v2163_v42  ;;  %v324_v46 = vadd.f32 %v2163_v42, %v323_v5  ;;  %v403_v53 = vmax.f32 %v329_v49, 0.0 }
  0xd4   :  { %v253_v4 = vpop.f32.mrf.mxu0  ;;  %v1730_v12 = vpop.f32.mrf.mxu1 }
  0xd5   :  { %v254_v6 = vadd.f32 %v2163_v42, %v253_v4  ;;  %1757 = vmatprep.mubr.msk.f32.mxu1 %vm418_vm1, %v386_v2  ;;  %v389_v7 = vmax.f32 %v259_v3, 0.0  ;;  %v402_v50 = vmax.f32 %v324_v46, 0.0  ;;  %v339_v54 = vadd.f32 %v1730_v12, %v2163_v42  ;;  %v2238_v12 = vld [vmem:[%s2789_s1 + $0x51] ss:$0 sm:$0xff] }
  0xd6   :  { %v1709_v8 = vpop.f32.mrf.mxu0  ;;  %1758 = vmatmul.mubr.msk.f32.gmra.mxu1 %vm418_vm1, %v387_v63  ;;  %v333_v19 = vpop.f32.mrf.mxu1 }
  0xd7   :  { %v388_v9 = vmax.f32 %v254_v6, 0.0  ;;  %v269_v10 = vadd.f32 %v1709_v8, %v2163_v42  ;;  %v334_v51 = vadd.f32 %v2163_v42, %v333_v19  ;;  %v405_v58 = vmax.f32 %v339_v54, 0.0 }
  0xd8   :  { %v263_v11 = vpop.f32.mrf.mxu0  ;;  %v1733_v26 = vpop.f32.mrf.mxu1 }
  0xd9   :  { %v264_v13 = vadd.f32 %v2163_v42, %v263_v11  ;;  %1760 = vmatprep.mubr.msk.f32.mxu1 %vm418_vm1, %v388_v9  ;;  %v391_v14 = vmax.f32 %v269_v10, 0.0  ;;  %v404_v55 = vmax.f32 %v334_v51, 0.0  ;;  %v349_v59 = vadd.f32 %v1733_v26, %v2163_v42 }
  0xda   :  { %v1712_v15 = vpop.f32.mrf.mxu0  ;;  %1761 = vmatmul.mubr.msk.f32.gmra.mxu1 %vm418_vm1, %v389_v7  ;;  %v343_v34 = vpop.f32.mrf.mxu1 }
  0xdb   :  { %v390_v16 = vmax.f32 %v264_v13, 0.0  ;;  %v279_v17 = vadd.f32 %v1712_v15, %v2163_v42  ;;  %v344_v56 = vadd.f32 %v2163_v42, %v343_v34  ;;  %v407_v63 = vmax.f32 %v349_v59, 0.0 }
  0xdc   :  { %v273_v18 = vpop.f32.mrf.mxu0  ;;  %v1736_v41 = vpop.f32.mrf.mxu1 }
  0xdd   :  { %v274_v20 = vadd.f32 %v2163_v42, %v273_v18  ;;  %1763 = vmatprep.mubr.msk.f32.mxu1 %vm418_vm1, %v390_v16  ;;  %v393_v21 = vmax.f32 %v279_v17, 0.0  ;;  %v406_v60 = vmax.f32 %v344_v56, 0.0  ;;  %v359_v0 = vadd.f32 %v1736_v41, %v2163_v42 }
  0xde   :  { %v1715_v22 = vpop.f32.mrf.mxu0  ;;  %1764 = vmatmul.mubr.msk.f32.gmra.mxu1 %vm418_vm1, %v391_v14  ;;  %v353_v47 = vpop.f32.mrf.mxu1 }
  0xdf   :  { %v392_v23 = vmax.f32 %v274_v20, 0.0  ;;  %v289_v24 = vadd.f32 %v1715_v22, %v2163_v42  ;;  %v354_v61 = vadd.f32 %v2163_v42, %v353_v47  ;;  %v409_v4 = vmax.f32 %v359_v0, 0.0 }
  0xe0   :  { %v283_v25 = vpop.f32.mrf.mxu0  ;;  %v1739_v52 = vpop.f32.mrf.mxu1 }
  0xe1   :  { %v284_v27 = vadd.f32 %v2163_v42, %v283_v25  ;;  %1766 = vmatprep.mubr.msk.f32.mxu1 %vm418_vm1, %v392_v23  ;;  %v395_v28 = vmax.f32 %v289_v24, 0.0  ;;  %v408_v1 = vmax.f32 %v354_v61, 0.0  ;;  %v369_v5 = vadd.f32 %v1739_v52, %v2163_v42 }
  0xe2   :  { %v1718_v29 = vpop.f32.mrf.mxu0  ;;  %1767 = vmatmul.mubr.msk.f32.gmra.mxu1 %vm418_vm1, %v393_v21  ;;  %v363_v57 = vpop.f32.mrf.mxu1 }
  0xe3   :  { %v394_v30 = vmax.f32 %v284_v27, 0.0  ;;  %v299_v31 = vadd.f32 %v1718_v29, %v2163_v42  ;;  %v364_v2 = vadd.f32 %v2163_v42, %v363_v57  ;;  %v411_v8 = vmax.f32 %v369_v5, 0.0 }
  0xe4   :  { %v293_v33 = vpop.f32.mrf.mxu0  ;;  %v1742_v62 = vpop.f32.mrf.mxu1 }
  0xe5   :  { %v294_v35 = vadd.f32 %v2163_v42, %v293_v33  ;;  %1769 = vmatprep.mubr.msk.f32.mxu1 %vm418_vm1, %v394_v30  ;;  %v397_v36 = vmax.f32 %v299_v31, 0.0  ;;  %v410_v6 = vmax.f32 %v364_v2, 0.0  ;;  %v379_v9 = vadd.f32 %v1742_v62, %v2163_v42 }
  0xe6   :  { %1770 = vmatmul.mubr.msk.f32.gmra.mxu1 %vm418_vm1, %v395_v28  ;;  %v373_v3 = vpop.f32.mrf.mxu1 }
  0xe7   :  { %v396_v38 = vmax.f32 %v294_v35, 0.0  ;;  %v374_v7 = vadd.f32 %v2163_v42, %v373_v3  ;;  %v413_v11 = vmax.f32 %v379_v9, 0.0 }
  0xe9   :  { %1772 = vmatprep.mubr.msk.f32.mxu1 %vm418_vm1, %v396_v38  ;;  %v412_v10 = vmax.f32 %v374_v7, 0.0 }
  0xea   :  { %1773 = vmatmul.mubr.msk.f32.gmra.mxu1 %vm418_vm1, %v397_v36 }
  0xeb   :  { %1775 = vmatprep.mubr.msk.f32.mxu1 %vm418_vm1, %v398_v39 }
  0xee   :  { %1776 = vmatmul.mubr.msk.f32.gmra.mxu1 %vm418_vm1, %v399_v43 }
  0xef   :  { %1778 = vmatprep.mubr.msk.f32.mxu1 %vm418_vm1, %v400_v45 }
  0xf2   :  { %1779 = vmatmul.mubr.msk.f32.gmra.mxu1 %vm418_vm1, %v401_v48 }
  0xf3   :  { %1781 = vmatprep.mubr.msk.f32.mxu1 %vm418_vm1, %v402_v50 }
  0xf6   :  { %1782 = vmatmul.mubr.msk.f32.gmra.mxu1 %vm418_vm1, %v403_v53 }
  0xf7   :  { %1784 = vmatprep.mubr.msk.f32.mxu1 %vm418_vm1, %v404_v55 }
  0xfa   :  { %1785 = vmatmul.mubr.msk.f32.gmra.mxu1 %vm418_vm1, %v405_v58 }
  0xfb   :  { %1787 = vmatprep.mubr.msk.f32.mxu1 %vm418_vm1, %v406_v60 }
  0xfe   :  { %1788 = vmatmul.mubr.msk.f32.gmra.mxu1 %vm418_vm1, %v407_v63 }
  0xff   :  { %1790 = vmatprep.mubr.msk.f32.mxu1 %vm418_vm1, %v408_v1 }
 0x102   :  { %1791 = vmatmul.mubr.msk.f32.gmra.mxu1 %vm418_vm1, %v409_v4 }
 0x103   :  { %1793 = vmatprep.mubr.msk.f32.mxu1 %vm418_vm1, %v410_v6 }
 0x106   :  { %1794 = vmatmul.mubr.msk.f32.gmra.mxu1 %vm418_vm1, %v411_v8 }
 0x107   :  { %1796 = vmatprep.mubr.msk.f32.mxu1 %vm418_vm1, %v412_v10 }
 0x10a   :  { %1797 = vmatmul.mubr.msk.f32.gmra.mxu1 %vm418_vm1, %v413_v11 }
 0x18e   :  { %v1753_v13 = vpop.f32.mrf.mxu1 }
 0x18f   :  { %v587_v42 = vadd.f32 %v1753_v13, %v2238_v12 }
 0x190   :  { %v581_v14 = vpop.f32.mrf.mxu1 }
 0x191   :  { %v582_v15 = vadd.f32 %v2238_v12, %v581_v14  ;;  %v741_v18 = vmax.f32 %v587_v42, 0.0 }
 0x192   :  { %v1756_v16 = vpop.f32.mrf.mxu1 }
 0x193   :  { %v740_v17 = vmax.f32 %v582_v15, 0.0  ;;  %v597_v19 = vadd.f32 %v1756_v16, %v2238_v12 }
 0x194   :  { %v591_v20 = vpop.f32.mrf.mxu1 }
 0x195   :  { %v592_v21 = vadd.f32 %v2238_v12, %v591_v20  ;;  %1807 = vmatprep.mubr.msk.f32.mxu0 %vm418_vm1, %v740_v17  ;;  %v743_v24 = vmax.f32 %v597_v19, 0.0 }
 0x196   :  { %v1759_v22 = vpop.f32.mrf.mxu1  ;;  %1808 = vmatmul.mubr.msk.f32.vlgmr.msra.gmra.mxu0 %vm418_vm1, %v741_v18 }
 0x197   :  { %v742_v23 = vmax.f32 %v592_v21, 0.0  ;;  %v607_v25 = vadd.f32 %v1759_v22, %v2238_v12 }
 0x198   :  { %v601_v26 = vpop.f32.mrf.mxu1 }
 0x199   :  { %v602_v27 = vadd.f32 %v2238_v12, %v601_v26  ;;  %1810 = vmatprep.mubr.msk.f32.mxu0 %vm418_vm1, %v742_v23  ;;  %v745_v30 = vmax.f32 %v607_v25, 0.0 }
 0x19a   :  { %v1762_v28 = vpop.f32.mrf.mxu1  ;;  %1811 = vmatmul.mubr.msk.f32.gmra.mxu0 %vm418_vm1, %v743_v24 }
 0x19b   :  { %v744_v29 = vmax.f32 %v602_v27, 0.0  ;;  %v617_v31 = vadd.f32 %v1762_v28, %v2238_v12 }
 0x19c   :  { %v611_v32 = vpop.f32.mrf.mxu1 }
 0x19d   :  { %v612_v33 = vadd.f32 %v2238_v12, %v611_v32  ;;  %1813 = vmatprep.mubr.msk.f32.mxu0 %vm418_vm1, %v744_v29  ;;  %v747_v36 = vmax.f32 %v617_v31, 0.0 }
 0x19e   :  { %v1765_v34 = vpop.f32.mrf.mxu1  ;;  %1814 = vmatmul.mubr.msk.f32.gmra.mxu0 %vm418_vm1, %v745_v30 }
 0x19f   :  { %v746_v35 = vmax.f32 %v612_v33, 0.0  ;;  %v627_v37 = vadd.f32 %v1765_v34, %v2238_v12 }
 0x1a0   :  { %v621_v38 = vpop.f32.mrf.mxu1 }
 0x1a1   :  { %v622_v39 = vadd.f32 %v2238_v12, %v621_v38  ;;  %1816 = vmatprep.mubr.msk.f32.mxu0 %vm418_vm1, %v746_v35  ;;  %v749_v43 = vmax.f32 %v627_v37, 0.0 }
 0x1a2   :  { %v1768_v40 = vpop.f32.mrf.mxu1  ;;  %1817 = vmatmul.mubr.msk.f32.gmra.mxu0 %vm418_vm1, %v747_v36 }
 0x1a3   :  { %v748_v41 = vmax.f32 %v622_v39, 0.0  ;;  %v637_v44 = vadd.f32 %v1768_v40, %v2238_v12 }
 0x1a4   :  { %v631_v45 = vpop.f32.mrf.mxu1 }
 0x1a5   :  { %v632_v46 = vadd.f32 %v2238_v12, %v631_v45  ;;  %1819 = vmatprep.mubr.msk.f32.mxu0 %vm418_vm1, %v748_v41  ;;  %v751_v49 = vmax.f32 %v637_v44, 0.0 }
 0x1a6   :  { %v1771_v47 = vpop.f32.mrf.mxu1  ;;  %1820 = vmatmul.mubr.msk.f32.gmra.mxu0 %vm418_vm1, %v749_v43 }
 0x1a7   :  { %v750_v48 = vmax.f32 %v632_v46, 0.0  ;;  %v647_v50 = vadd.f32 %v1771_v47, %v2238_v12  ;;  %v2307_v46 = vld [vmem:[%s2789_s1 + $0x52] ss:$0 sm:$0xff] }
 0x1a8   :  { %v641_v51 = vpop.f32.mrf.mxu1 }
 0x1a9   :  { %v642_v52 = vadd.f32 %v2238_v12, %v641_v51  ;;  %1822 = vmatprep.mubr.msk.f32.mxu0 %vm418_vm1, %v750_v48  ;;  %v753_v55 = vmax.f32 %v647_v50, 0.0 }
 0x1aa   :  { %v1774_v53 = vpop.f32.mrf.mxu1  ;;  %1823 = vmatmul.mubr.msk.f32.gmra.mxu0 %vm418_vm1, %v751_v49 }
 0x1ab   :  { %v752_v54 = vmax.f32 %v642_v52, 0.0  ;;  %v657_v56 = vadd.f32 %v1774_v53, %v2238_v12 }
 0x1ac   :  { %v651_v57 = vpop.f32.mrf.mxu1 }
 0x1ad   :  { %v652_v58 = vadd.f32 %v2238_v12, %v651_v57  ;;  %1825 = vmatprep.mubr.msk.f32.mxu0 %vm418_vm1, %v752_v54  ;;  %v755_v61 = vmax.f32 %v657_v56, 0.0 }
 0x1ae   :  { %v1777_v59 = vpop.f32.mrf.mxu1  ;;  %1826 = vmatmul.mubr.msk.f32.gmra.mxu0 %vm418_vm1, %v753_v55 }
 0x1af   :  { %v754_v60 = vmax.f32 %v652_v58, 0.0  ;;  %v667_v62 = vadd.f32 %v1777_v59, %v2238_v12 }
 0x1b0   :  { %v661_v63 = vpop.f32.mrf.mxu1 }
 0x1b1   :  { %v662_v0 = vadd.f32 %v2238_v12, %v661_v63  ;;  %1828 = vmatprep.mubr.msk.f32.mxu0 %vm418_vm1, %v754_v60  ;;  %v757_v3 = vmax.f32 %v667_v62, 0.0 }
 0x1b2   :  { %v1780_v1 = vpop.f32.mrf.mxu1  ;;  %1829 = vmatmul.mubr.msk.f32.gmra.mxu0 %vm418_vm1, %v755_v61 }
 0x1b3   :  { %v756_v2 = vmax.f32 %v662_v0, 0.0  ;;  %v677_v4 = vadd.f32 %v1780_v1, %v2238_v12 }
 0x1b4   :  { %v671_v5 = vpop.f32.mrf.mxu1 }
 0x1b5   :  { %v672_v6 = vadd.f32 %v2238_v12, %v671_v5  ;;  %1831 = vmatprep.mubr.msk.f32.mxu0 %vm418_vm1, %v756_v2  ;;  %v759_v9 = vmax.f32 %v677_v4, 0.0 }
 0x1b6   :  { %v1783_v7 = vpop.f32.mrf.mxu1  ;;  %1832 = vmatmul.mubr.msk.f32.gmra.mxu0 %vm418_vm1, %v757_v3 }
 0x1b7   :  { %v758_v8 = vmax.f32 %v672_v6, 0.0  ;;  %v687_v10 = vadd.f32 %v1783_v7, %v2238_v12 }
 0x1b8   :  { %v681_v11 = vpop.f32.mrf.mxu1 }
 0x1b9   :  { %v682_v13 = vadd.f32 %v2238_v12, %v681_v11  ;;  %1834 = vmatprep.mubr.msk.f32.mxu0 %vm418_vm1, %v758_v8  ;;  %v761_v15 = vmax.f32 %v687_v10, 0.0 }
 0x1ba   :  { %v1786_v42 = vpop.f32.mrf.mxu1  ;;  %1835 = vmatmul.mubr.msk.f32.gmra.mxu0 %vm418_vm1, %v759_v9 }
 0x1bb   :  { %v760_v14 = vmax.f32 %v682_v13, 0.0  ;;  %v697_v16 = vadd.f32 %v1786_v42, %v2238_v12 }
 0x1bc   :  { %v691_v17 = vpop.f32.mrf.mxu1 }
 0x1bd   :  { %v692_v18 = vadd.f32 %v2238_v12, %v691_v17  ;;  %1837 = vmatprep.mubr.msk.f32.mxu0 %vm418_vm1, %v760_v14  ;;  %v763_v21 = vmax.f32 %v697_v16, 0.0 }
 0x1be   :  { %v1789_v19 = vpop.f32.mrf.mxu1  ;;  %1838 = vmatmul.mubr.msk.f32.gmra.mxu0 %vm418_vm1, %v761_v15 }
 0x1bf   :  { %v762_v20 = vmax.f32 %v692_v18, 0.0  ;;  %v707_v22 = vadd.f32 %v1789_v19, %v2238_v12 }
 0x1c0   :  { %v701_v23 = vpop.f32.mrf.mxu1 }
 0x1c1   :  { %v702_v24 = vadd.f32 %v2238_v12, %v701_v23  ;;  %1840 = vmatprep.mubr.msk.f32.mxu0 %vm418_vm1, %v762_v20  ;;  %v765_v27 = vmax.f32 %v707_v22, 0.0 }
 0x1c2   :  { %v1792_v25 = vpop.f32.mrf.mxu1  ;;  %1841 = vmatmul.mubr.msk.f32.gmra.mxu0 %vm418_vm1, %v763_v21 }
 0x1c3   :  { %v764_v26 = vmax.f32 %v702_v24, 0.0  ;;  %v717_v28 = vadd.f32 %v1792_v25, %v2238_v12 }
 0x1c4   :  { %v711_v29 = vpop.f32.mrf.mxu1 }
 0x1c5   :  { %v712_v30 = vadd.f32 %v2238_v12, %v711_v29  ;;  %1843 = vmatprep.mubr.msk.f32.mxu0 %vm418_vm1, %v764_v26  ;;  %v767_v33 = vmax.f32 %v717_v28, 0.0 }
 0x1c6   :  { %v1795_v31 = vpop.f32.mrf.mxu1  ;;  %1844 = vmatmul.mubr.msk.f32.gmra.mxu0 %vm418_vm1, %v765_v27 }
 0x1c7   :  { %v766_v32 = vmax.f32 %v712_v30, 0.0  ;;  %v727_v34 = vadd.f32 %v1795_v31, %v2238_v12 }
 0x1c8   :  { %v721_v35 = vpop.f32.mrf.mxu1 }
 0x1c9   :  { %v722_v36 = vadd.f32 %v2238_v12, %v721_v35  ;;  %1846 = vmatprep.mubr.msk.f32.mxu0 %vm418_vm1, %v766_v32  ;;  %v769_v39 = vmax.f32 %v727_v34, 0.0 }
 0x1ca   :  { %v1798_v37 = vpop.f32.mrf.mxu1  ;;  %1847 = vmatmul.mubr.msk.f32.gmra.mxu0 %vm418_vm1, %v767_v33 }
 0x1cb   :  { %v768_v38 = vmax.f32 %v722_v36, 0.0  ;;  %v737_v40 = vadd.f32 %v1798_v37, %v2238_v12 }
 0x1cc   :  { %v731_v41 = vpop.f32.mrf.mxu1 }
 0x1cd   :  { %v732_v43 = vadd.f32 %v2238_v12, %v731_v41  ;;  %1849 = vmatprep.mubr.msk.f32.mxu0 %vm418_vm1, %v768_v38  ;;  %v771_v45 = vmax.f32 %v737_v40, 0.0 }
 0x1ce   :  { %1850 = vmatmul.mubr.msk.f32.gmra.mxu0 %vm418_vm1, %v769_v39 }
 0x1cf   :  { %v770_v44 = vmax.f32 %v732_v43, 0.0 }
 0x1d1   :  { %1852 = vmatprep.mubr.msk.f32.mxu0 %vm418_vm1, %v770_v44 }
 0x1d2   :  { %1853 = vmatmul.mubr.msk.f32.gmra.mxu0 %vm418_vm1, %v771_v45 }
 0x256   :  { %v1809_v47 = vpop.f32.mrf.mxu0 }
 0x257   :  { %v2310_v48 = vadd.f32 %v1809_v47, %v2307_v46 }
 0x258   :  { %v938_v12 = vpop.f32.mrf.mxu0 }
 0x259   :  { %v2313_v49 = vadd.f32 %v2307_v46, %v938_v12  ;;  %v1100_v50 = vsel %vm418_vm1, %v2310_v48, -inf }
 0x25a   :  { %1101 = vmax.xlane.f32.xlu0 %v1100_v50  ;;  %v1812_v51 = vpop.f32.mrf.mxu0 }
 0x25b   :  { %v2318_v52 = vadd.f32 %v1812_v51, %v2307_v46  ;;  %v1097_v56 = vsel %vm418_vm1, %v2313_v49, -inf }
 0x25c   :  { %v948_v53 = vpop.f32.mrf.mxu0 }
 0x25d   :  { %v2321_v54 = vadd.f32 %v2307_v46, %v948_v53  ;;  %v1106_v55 = vsel %vm418_vm1, %v2318_v52, -inf }
 0x25e   :  { %1107 = vmax.xlane.f32.xlu1 %v1106_v55  ;;  %v1815_v57 = vpop.f32.mrf.mxu0  ;;  %1098 = vmax.xlane.f32.xlu0 %v1097_v56 }
 0x25f   :  { %v2328_v59 = vadd.f32 %v1815_v57, %v2307_v46  ;;  %v1103_v61 = vsel %vm418_vm1, %v2321_v54, -inf }
 0x260   :  { %v958_v58 = vpop.f32.mrf.mxu0 }
 0x261   :  { %v2331_v60 = vadd.f32 %v2307_v46, %v958_v58  ;;  %v1112_v3 = vsel %vm418_vm1, %v2328_v59, -inf }
 0x262   :  { %v1818_v62 = vpop.f32.mrf.mxu0  ;;  %1104 = vmax.xlane.f32.xlu1 %v1103_v61 }
 0x263   :  { %v1109_v63 = vsel %vm418_vm1, %v2331_v60, -inf  ;;  %v2338_v1 = vadd.f32 %v1818_v62, %v2307_v46 }
 0x264   :  { %v968_v0 = vpop.f32.mrf.mxu0  ;;  %1110 = vmax.xlane.f32.xlu0 %v1109_v63 }
 0x265   :  { %v2341_v2 = vadd.f32 %v2307_v46, %v968_v0  ;;  %v1118_v9 = vsel %vm418_vm1, %v2338_v1, -inf }
 0x266   :  { %v1821_v4 = vpop.f32.mrf.mxu0  ;;  %1113 = vmax.xlane.f32.xlu1 %v1112_v3 }
 0x267   :  { %v1115_v5 = vsel %vm418_vm1, %v2341_v2, -inf  ;;  %v2348_v7 = vadd.f32 %v1821_v4, %v2307_v46 }
 0x268   :  { %v978_v6 = vpop.f32.mrf.mxu0  ;;  %1116 = vmax.xlane.f32.xlu0 %v1115_v5 }
 0x269   :  { %v2351_v8 = vadd.f32 %v2307_v46, %v978_v6  ;;  %v1124_v15 = vsel %vm418_vm1, %v2348_v7, -inf }
 0x26a   :  { %v1824_v10 = vpop.f32.mrf.mxu0  ;;  %1119 = vmax.xlane.f32.xlu1 %v1118_v9 }
 0x26b   :  { %v1121_v11 = vsel %vm418_vm1, %v2351_v8, -inf  ;;  %v2358_v42 = vadd.f32 %v1824_v10, %v2307_v46 }
 0x26c   :  { %v988_v13 = vpop.f32.mrf.mxu0  ;;  %1122 = vmax.xlane.f32.xlu0 %v1121_v11 }
 0x26d   :  { %v2361_v14 = vadd.f32 %v2307_v46, %v988_v13  ;;  %v1130_v21 = vsel %vm418_vm1, %v2358_v42, -inf }
 0x26e   :  { %v1827_v16 = vpop.f32.mrf.mxu0  ;;  %1125 = vmax.xlane.f32.xlu1 %v1124_v15 }
 0x26f   :  { %v1127_v17 = vsel %vm418_vm1, %v2361_v14, -inf  ;;  %v2368_v19 = vadd.f32 %v1827_v16, %v2307_v46 }
 0x270   :  { %v998_v18 = vpop.f32.mrf.mxu0  ;;  %1128 = vmax.xlane.f32.xlu0 %v1127_v17 }
 0x271   :  { %v2371_v20 = vadd.f32 %v2307_v46, %v998_v18  ;;  %v1136_v27 = vsel %vm418_vm1, %v2368_v19, -inf }
 0x272   :  { %v1830_v22 = vpop.f32.mrf.mxu0  ;;  %1131 = vmax.xlane.f32.xlu1 %v1130_v21 }
 0x273   :  { %v1133_v23 = vsel %vm418_vm1, %v2371_v20, -inf  ;;  %v2378_v25 = vadd.f32 %v1830_v22, %v2307_v46 }
 0x274   :  { %v1008_v24 = vpop.f32.mrf.mxu0  ;;  %1134 = vmax.xlane.f32.xlu0 %v1133_v23 }
 0x275   :  { %v2381_v26 = vadd.f32 %v2307_v46, %v1008_v24  ;;  %v1142_v33 = vsel %vm418_vm1, %v2378_v25, -inf }
 0x276   :  { %v1833_v28 = vpop.f32.mrf.mxu0  ;;  %1137 = vmax.xlane.f32.xlu1 %v1136_v27 }
 0x277   :  { %v1139_v29 = vsel %vm418_vm1, %v2381_v26, -inf  ;;  %v2388_v31 = vadd.f32 %v1833_v28, %v2307_v46 }
 0x278   :  { %v1018_v30 = vpop.f32.mrf.mxu0  ;;  %1140 = vmax.xlane.f32.xlu0 %v1139_v29 }
 0x279   :  { %v2391_v32 = vadd.f32 %v2307_v46, %v1018_v30  ;;  %v1148_v39 = vsel %vm418_vm1, %v2388_v31, -inf }
 0x27a   :  { %v1836_v34 = vpop.f32.mrf.mxu0  ;;  %1143 = vmax.xlane.f32.xlu1 %v1142_v33 }
 0x27b   :  { %v1145_v35 = vsel %vm418_vm1, %v2391_v32, -inf  ;;  %v2398_v37 = vadd.f32 %v1836_v34, %v2307_v46 }
 0x27c   :  { %v1028_v36 = vpop.f32.mrf.mxu0  ;;  %1146 = vmax.xlane.f32.xlu0 %v1145_v35 }
 0x27d   :  { %v2401_v38 = vadd.f32 %v2307_v46, %v1028_v36  ;;  %v1154_v47 = vsel %vm418_vm1, %v2398_v37, -inf }
 0x27e   :  { %v1839_v40 = vpop.f32.mrf.mxu0  ;;  %1149 = vmax.xlane.f32.xlu1 %v1148_v39 }
 0x27f   :  { %v1151_v41 = vsel %vm418_vm1, %v2401_v38, -inf  ;;  %v2408_v44 = vadd.f32 %v1839_v40, %v2307_v46 }
 0x280   :  { %v1038_v43 = vpop.f32.mrf.mxu0  ;;  %1152 = vmax.xlane.f32.xlu0 %v1151_v41 }
 0x281   :  { %v2411_v45 = vadd.f32 %v2307_v46, %v1038_v43  ;;  %v1160_v56 = vsel %vm418_vm1, %v2408_v44, -inf }
 0x282   :  { %v1842_v12 = vpop.f32.mrf.mxu0  ;;  %1155 = vmax.xlane.f32.xlu1 %v1154_v47 }
 0x283   :  { %v1157_v50 = vsel %vm418_vm1, %v2411_v45, -inf  ;;  %v2418_v53 = vadd.f32 %v1842_v12, %v2307_v46 }
 0x284   :  { %v1048_v51 = vpop.f32.mrf.mxu0  ;;  %1158 = vmax.xlane.f32.xlu0 %v1157_v50 }
 0x285   :  { %v2421_v55 = vadd.f32 %v2307_v46, %v1048_v51  ;;  %v1166_v0 = vsel %vm418_vm1, %v2418_v53, -inf }
 0x286   :  { %v1845_v57 = vpop.f32.mrf.mxu0  ;;  %1161 = vmax.xlane.f32.xlu1 %v1160_v56 }
 0x287   :  { %v1163_v58 = vsel %vm418_vm1, %v2421_v55, -inf  ;;  %v2428_v62 = vadd.f32 %v1845_v57, %v2307_v46 }
 0x288   :  { %v1058_v61 = vpop.f32.mrf.mxu0  ;;  %1164 = vmax.xlane.f32.xlu0 %v1163_v58 }
 0x289   :  { %v2431_v63 = vadd.f32 %v2307_v46, %v1058_v61  ;;  %v1172_v10 = vsel %vm418_vm1, %v2428_v62, -inf }
 0x28a   :  { %v1848_v3 = vpop.f32.mrf.mxu0  ;;  %1167 = vmax.xlane.f32.xlu1 %v1166_v0 }
 0x28b   :  { %v1169_v4 = vsel %vm418_vm1, %v2431_v63, -inf  ;;  %v2438_v6 = vadd.f32 %v1848_v3, %v2307_v46 }
 0x28c   :  { %v1068_v5 = vpop.f32.mrf.mxu0  ;;  %1170 = vmax.xlane.f32.xlu0 %v1169_v4 }
 0x28d   :  { %v2441_v9 = vadd.f32 %v2307_v46, %v1068_v5  ;;  %v1178_v18 = vsel %vm418_vm1, %v2438_v6, -inf }
 0x28e   :  { %v1851_v11 = vpop.f32.mrf.mxu0  ;;  %1173 = vmax.xlane.f32.xlu1 %v1172_v10 }
 0x28f   :  { %v1175_v13 = vsel %vm418_vm1, %v2441_v9, -inf  ;;  %v2448_v16 = vadd.f32 %v1851_v11, %v2307_v46 }
 0x290   :  { %v1078_v15 = vpop.f32.mrf.mxu0  ;;  %1176 = vmax.xlane.f32.xlu0 %v1175_v13 }
 0x291   :  { %v2451_v17 = vadd.f32 %v2307_v46, %v1078_v15  ;;  %v1184_v28 = vsel %vm418_vm1, %v2448_v16, -inf }
 0x292   :  { %v1854_v21 = vpop.f32.mrf.mxu0  ;;  %1179 = vmax.xlane.f32.xlu1 %v1178_v18 }
 0x293   :  { %v1181_v22 = vsel %vm418_vm1, %v2451_v17, -inf  ;;  %v2458_v24 = vadd.f32 %v1854_v21, %v2307_v46 }
 0x294   :  { %v1088_v23 = vpop.f32.mrf.mxu0  ;;  %1182 = vmax.xlane.f32.xlu0 %v1181_v22 }
 0x295   :  { %v2461_v27 = vadd.f32 %v2307_v46, %v1088_v23  ;;  %v1190_v30 = vsel %vm418_vm1, %v2458_v24, -inf }
 0x296   :  { %1185 = vmax.xlane.f32.xlu1 %v1184_v28 }
 0x297   :  { %v1187_v29 = vsel %vm418_vm1, %v2461_v27, -inf }
 0x298   :  { %1188 = vmax.xlane.f32.xlu0 %v1187_v29 }
 0x29a   :  { %1191 = vmax.xlane.f32.xlu1 %v1190_v30 }
 0x2e3   :  { %v1102_v33 = vpop.xlane.xlu0 %1101 }
 0x2e4   :  { %v1194_v34 = vsub.f32 %v2310_v48, %v1102_v33 }
 0x2e6   :  { %v1227_v35 = vmul.f32 1.442695, %v1194_v34 }
 0x2e7   :  { %v1108_v36 = vpop.xlane.xlu1 %1107  ;;  %v1099_v39 = vpop.xlane.xlu0 %1098 }
 0x2e8   :  { %1859 = vpow2.f32 %v1227_v35  ;;  %v1196_v46 = vsub.f32 %v2318_v52, %v1108_v36  ;;  %v1193_v40 = vsub.f32 %v2313_v49, %v1099_v39 }
 0x2ea   :  { %v1231_v41 = vmul.f32 1.442695, %v1196_v46  ;;  %v1225_v43 = vmul.f32 1.442695, %v1193_v40 }
 0x2eb   :  { %v1105_v47 = vpop.xlane.xlu1 %1104 }
 0x2ec   :  { %1861 = vpow2.f32 %v1231_v41  ;;  %v1195_v12 = vsub.f32 %v2321_v54, %v1105_v47 }
 0x2ed   :  { %1863 = vpow2.f32 %v1225_v43  ;;  %v1111_v50 = vpop.xlane.xlu0 %1110 }
 0x2ee   :  { %v1229_v51 = vmul.f32 1.442695, %v1195_v12  ;;  %v1197_v56 = vsub.f32 %v2331_v60, %v1111_v50 }
 0x2ef   :  { %v1114_v48 = vpop.xlane.xlu1 %1113 }
 0x2f0   :  { %1865 = vpow2.f32 %v1229_v51  ;;  %v1233_v57 = vmul.f32 1.442695, %v1197_v56  ;;  %v1198_v58 = vsub.f32 %v2328_v59, %v1114_v48 }
 0x2f1   :  { %v1117_v61 = vpop.xlane.xlu0 %1116 }
 0x2f2   :  { %v1235_v52 = vmul.f32 1.442695, %v1198_v58  ;;  %v1199_v49 = vsub.f32 %v2341_v2, %v1117_v61  ;;  %1867 = vpow2.f32 %v1233_v57 }
 0x2f3   :  { %v1120_v0 = vpop.xlane.xlu1 %1119 }
 0x2f4   :  { %1869 = vpow2.f32 %v1235_v52  ;;  %v1237_v3 = vmul.f32 1.442695, %v1199_v49  ;;  %v1200_v54 = vsub.f32 %v2338_v1, %v1120_v0 }
 0x2f5   :  { %v2477_v4 = vpop.eup %1859  ;;  %v1123_v5 = vpop.xlane.xlu0 %1122 }
 0x2f6   :  { %v1239_v10 = vmul.f32 1.442695, %v1200_v54  ;;  %v1201_v60 = vsub.f32 %v2351_v8, %v1123_v5  ;;  %v1292_v11 = vsel %vm418_vm1, %v2477_v4, 0.0  ;;  %1871 = vpow2.f32 %v1237_v3 }
 0x2f7   :  { %1293 = vadd.xlane.f32.xlu1 %v1292_v11  ;;  %v1126_v59 = vpop.xlane.xlu1 %1125 }
 0x2f8   :  { %1873 = vpow2.f32 %v1239_v10  ;;  %v1241_v2 = vmul.f32 1.442695, %v1201_v60  ;;  %v1202_v13 = vsub.f32 %v2348_v7, %v1126_v59 }
 0x2f9   :  { %v2483_v15 = vpop.eup %1861  ;;  %v1129_v18 = vpop.xlane.xlu0 %1128 }
 0x2fa   :  { %v2485_v1 = vpop.eup %1863  ;;  %v1243_v21 = vmul.f32 1.442695, %v1202_v13  ;;  %v1203_v22 = vsub.f32 %v2361_v14, %v1129_v18  ;;  %v1298_v8 = vsel %vm418_vm1, %v2483_v15, 0.0  ;;  %1875 = vpow2.f32 %v1241_v2 }
 0x2fb   :  { %1299 = vadd.xlane.f32.xlu1 %v1298_v8  ;;  %v1132_v23 = vpop.xlane.xlu1 %1131  ;;  %v1289_v28 = vsel %vm418_vm1, %v2485_v1, 0.0 }
 0x2fc   :  { %1877 = vpow2.f32 %v1243_v21  ;;  %v1245_v29 = vmul.f32 1.442695, %v1203_v22  ;;  %v1204_v7 = vsub.f32 %v2358_v42, %v1132_v23  ;;  %1290 = vadd.xlane.f32.xlu0 %v1289_v28 }
 0x2fd   :  { %v2493_v30 = vpop.eup %1865  ;;  %v1135_v33 = vpop.xlane.xlu0 %1134 }
 0x2fe   :  { %v1247_v34 = vmul.f32 1.442695, %v1204_v7  ;;  %v1205_v14 = vsub.f32 %v2371_v20, %v1135_v33  ;;  %v1295_v35 = vsel %vm418_vm1, %v2493_v30, 0.0  ;;  %1879 = vpow2.f32 %v1245_v29 }
 0x2ff   :  { %v1138_v36 = vpop.xlane.xlu1 %1137  ;;  %v2498_v39 = vpop.eup %1867 }
 0x300   :  { %1881 = vpow2.f32 %v1247_v34  ;;  %v1249_v46 = vmul.f32 1.442695, %v1205_v14  ;;  %v1206_v40 = vsub.f32 %v2368_v19, %v1138_v36  ;;  %1296 = vadd.xlane.f32.xlu0 %v1295_v35  ;;  %v1301_v50 = vsel %vm418_vm1, %v2498_v39, 0.0 }
 0x301   :  { %v2501_v42 = vpop.eup %1869  ;;  %v1141_v41 = vpop.xlane.xlu0 %1140 }
 0x302   :  { %v1251_v43 = vmul.f32 1.442695, %v1206_v40  ;;  %v1207_v47 = vsub.f32 %v2381_v26, %v1141_v41  ;;  %v1304_v20 = vsel %vm418_vm1, %v2501_v42, 0.0  ;;  %1883 = vpow2.f32 %v1249_v46 }
 0x303   :  { %1305 = vadd.xlane.f32.xlu1 %v1304_v20  ;;  %v1144_v12 = vpop.xlane.xlu1 %1143  ;;  %v2508_v51 = vpop.eup %1871 }
 0x304   :  { %1885 = vpow2.f32 %v1251_v43  ;;  %v1253_v19 = vmul.f32 1.442695, %v1207_v47  ;;  %v1208_v56 = vsub.f32 %v2378_v25, %v1144_v12  ;;  %1302 = vadd.xlane.f32.xlu0 %v1301_v50  ;;  %v1307_v49 = vsel %vm418_vm1, %v2508_v51, 0.0 }
 0x305   :  { %v2511_v48 = vpop.eup %1873  ;;  %v1147_v57 = vpop.xlane.xlu0 %1146 }
 0x306   :  { %v1255_v26 = vmul.f32 1.442695, %v1208_v56  ;;  %v1209_v58 = vsub.f32 %v2391_v32, %v1147_v57  ;;  %v1310_v61 = vsel %vm418_vm1, %v2511_v48, 0.0  ;;  %1887 = vpow2.f32 %v1253_v19 }
 0x307   :  { %1311 = vadd.xlane.f32.xlu1 %v1310_v61  ;;  %v1150_v52 = vpop.xlane.xlu1 %1149  ;;  %v2518_v0 = vpop.eup %1875 }
 0x308   :  { %1889 = vpow2.f32 %v1255_v26  ;;  %v1257_v25 = vmul.f32 1.442695, %v1209_v58  ;;  %v1210_v3 = vsub.f32 %v2388_v31, %v1150_v52  ;;  %1308 = vadd.xlane.f32.xlu0 %v1307_v49  ;;  %v1313_v59 = vsel %vm418_vm1, %v2518_v0, 0.0 }
 0x309   :  { %v2521_v54 = vpop.eup %1877  ;;  %v1153_v5 = vpop.xlane.xlu0 %1152 }
 0x30a   :  { %v1259_v32 = vmul.f32 1.442695, %v1210_v3  ;;  %v1211_v10 = vsub.f32 %v2401_v38, %v1153_v5  ;;  %v1316_v60 = vsel %vm418_vm1, %v2521_v54, 0.0  ;;  %1891 = vpow2.f32 %v1257_v25 }
 0x30b   :  { %1317 = vadd.xlane.f32.xlu1 %v1316_v60  ;;  %v1156_v11 = vpop.xlane.xlu1 %1155  ;;  %v2528_v2 = vpop.eup %1879 }
 0x30c   :  { %1893 = vpow2.f32 %v1259_v32  ;;  %v1261_v31 = vmul.f32 1.442695, %v1211_v10  ;;  %v1212_v13 = vsub.f32 %v2398_v37, %v1156_v11  ;;  %1314 = vadd.xlane.f32.xlu0 %v1313_v59  ;;  %v1319_v28 = vsel %vm418_vm1, %v2528_v2, 0.0 }
 0x30d   :  { %v2531_v18 = vpop.eup %1881  ;;  %v1159_v21 = vpop.xlane.xlu0 %1158 }
 0x30e   :  { %v1263_v38 = vmul.f32 1.442695, %v1212_v13  ;;  %v1213_v22 = vsub.f32 %v2411_v45, %v1159_v21  ;;  %v1322_v8 = vsel %vm418_vm1, %v2531_v18, 0.0  ;;  %1895 = vpow2.f32 %v1261_v31 }
 0x30f   :  { %1323 = vadd.xlane.f32.xlu1 %v1322_v8  ;;  %v1162_v23 = vpop.xlane.xlu1 %1161  ;;  %v2538_v29 = vpop.eup %1883 }
 0x310   :  { %1897 = vpow2.f32 %v1263_v38  ;;  %v1265_v37 = vmul.f32 1.442695, %v1213_v22  ;;  %v1214_v7 = vsub.f32 %v2408_v44, %v1162_v23  ;;  %1320 = vadd.xlane.f32.xlu0 %v1319_v28  ;;  %v1325_v46 = vsel %vm418_vm1, %v2538_v29, 0.0 }
 0x311   :  { %v2541_v33 = vpop.eup %1885  ;;  %v1165_v34 = vpop.xlane.xlu0 %1164 }
 0x312   :  { %v1267_v45 = vmul.f32 1.442695, %v1214_v7  ;;  %v1215_v14 = vsub.f32 %v2421_v55, %v1165_v34  ;;  %v1328_v35 = vsel %vm418_vm1, %v2541_v33, 0.0  ;;  %1899 = vpow2.f32 %v1265_v37 }
 0x313   :  { %1329 = vadd.xlane.f32.xlu1 %v1328_v35  ;;  %v1168_v36 = vpop.xlane.xlu1 %1167  ;;  %v2548_v40 = vpop.eup %1887 }
 0x314   :  { %1901 = vpow2.f32 %v1267_v45  ;;  %v1269_v44 = vmul.f32 1.442695, %v1215_v14  ;;  %v1216_v41 = vsub.f32 %v2418_v53, %v1168_v36  ;;  %1326 = vadd.xlane.f32.xlu0 %v1325_v46  ;;  %v1331_v19 = vsel %vm418_vm1, %v2548_v40, 0.0 }
 0x315   :  { %v2551_v43 = vpop.eup %1889  ;;  %v1171_v47 = vpop.xlane.xlu0 %1170 }
 0x316   :  { %v1271_v55 = vmul.f32 1.442695, %v1216_v41  ;;  %v1217_v20 = vsub.f32 %v2431_v63, %v1171_v47  ;;  %v1334_v12 = vsel %vm418_vm1, %v2551_v43, 0.0  ;;  %1903 = vpow2.f32 %v1269_v44 }
 0x317   :  { %1335 = vadd.xlane.f32.xlu1 %v1334_v12  ;;  %v1174_v50 = vpop.xlane.xlu1 %1173  ;;  %v2558_v56 = vpop.eup %1891 }
 0x318   :  { %1905 = vpow2.f32 %v1271_v55  ;;  %v1273_v53 = vmul.f32 1.442695, %v1217_v20  ;;  %v1218_v57 = vsub.f32 %v2428_v62, %v1174_v50  ;;  %1332 = vadd.xlane.f32.xlu0 %v1331_v19  ;;  %v1337_v25 = vsel %vm418_vm1, %v2558_v56, 0.0 }
 0x319   :  { %v2561_v26 = vpop.eup %1893  ;;  %v1177_v58 = vpop.xlane.xlu0 %1176 }
 0x31a   :  { %v1275_v63 = vmul.f32 1.442695, %v1218_v57  ;;  %v1219_v61 = vsub.f32 %v2441_v9, %v1177_v58  ;;  %v1340_v52 = vsel %vm418_vm1, %v2561_v26, 0.0  ;;  %1907 = vpow2.f32 %v1273_v53 }
 0x31b   :  { %1341 = vadd.xlane.f32.xlu1 %v1340_v52  ;;  %v1180_v49 = vpop.xlane.xlu1 %1179  ;;  %v2568_v3 = vpop.eup %1895 }
 0x31c   :  { %1909 = vpow2.f32 %v1275_v63  ;;  %v1277_v62 = vmul.f32 1.442695, %v1219_v61  ;;  %v1220_v5 = vsub.f32 %v2438_v6, %v1180_v49  ;;  %1338 = vadd.xlane.f32.xlu0 %v1337_v25  ;;  %v1343_v31 = vsel %vm418_vm1, %v2568_v3, 0.0 }
 0x31d   :  { %v2571_v32 = vpop.eup %1897  ;;  %v1183_v10 = vpop.xlane.xlu0 %1182 }
 0x31e   :  { %v1279_v9 = vmul.f32 1.442695, %v1220_v5  ;;  %v1221_v60 = vsub.f32 %v2451_v17, %v1183_v10  ;;  %v1346_v11 = vsel %vm418_vm1, %v2571_v32, 0.0  ;;  %1911 = vpow2.f32 %v1277_v62 }
 0x31f   :  { %1347 = vadd.xlane.f32.xlu1 %v1346_v11  ;;  %v1186_v59 = vpop.xlane.xlu1 %1185  ;;  %v2578_v13 = vpop.eup %1899 }
 0x320   :  { %1913 = vpow2.f32 %v1279_v9  ;;  %v1281_v6 = vmul.f32 1.442695, %v1221_v60  ;;  %v1222_v21 = vsub.f32 %v2448_v16, %v1186_v59  ;;  %1344 = vadd.xlane.f32.xlu0 %v1343_v31  ;;  %v1349_v37 = vsel %vm418_vm1, %v2578_v13, 0.0 }
 0x321   :  { %v2581_v38 = vpop.eup %1901  ;;  %v1189_v22 = vpop.xlane.xlu0 %1188 }
 0x322   :  { %v1283_v17 = vmul.f32 1.442695, %v1222_v21  ;;  %v1223_v8 = vsub.f32 %v2461_v27, %v1189_v22  ;;  %v1352_v23 = vsel %vm418_vm1, %v2581_v38, 0.0  ;;  %1915 = vpow2.f32 %v1281_v6 }
 0x323   :  { %1353 = vadd.xlane.f32.xlu1 %v1352_v23  ;;  %v1192_v28 = vpop.xlane.xlu1 %1191  ;;  %v2588_v7 = vpop.eup %1903 }
 0x324   :  { %1917 = vpow2.f32 %v1283_v17  ;;  %v1285_v16 = vmul.f32 1.442695, %v1223_v8  ;;  %v1224_v34 = vsub.f32 %v2458_v24, %v1192_v28  ;;  %1350 = vadd.xlane.f32.xlu0 %v1349_v37  ;;  %v1355_v35 = vsel %vm418_vm1, %v2588_v7, 0.0 }
 0x325   :  { %v2591_v45 = vpop.eup %1905 }
 0x326   :  { %v1287_v14 = vmul.f32 1.442695, %v1224_v34  ;;  %v1358_v27 = vsel %vm418_vm1, %v2591_v45, 0.0  ;;  %1919 = vpow2.f32 %v1285_v16 }
 0x327   :  { %1359 = vadd.xlane.f32.xlu1 %v1358_v27  ;;  %v2597_v36 = vpop.eup %1907 }
 0x328   :  { %1921 = vpow2.f32 %v1287_v14  ;;  %1356 = vadd.xlane.f32.xlu0 %v1355_v35  ;;  %v1361_v44 = vsel %vm418_vm1, %v2597_v36, 0.0 }
 0x329   :  { %v2599_v46 = vpop.eup %1909 }
 0x32a   :  { %v1364_v24 = vsel %vm418_vm1, %v2599_v46, 0.0 }
 0x32b   :  { %1365 = vadd.xlane.f32.xlu1 %v1364_v24  ;;  %v2605_v41 = vpop.eup %1911 }
 0x32c   :  { %1362 = vadd.xlane.f32.xlu0 %v1361_v44  ;;  %v1367_v20 = vsel %vm418_vm1, %v2605_v41, 0.0 }
 0x32d   :  { %v2607_v47 = vpop.eup %1913 }
 0x32e   :  { %v1370_v55 = vsel %vm418_vm1, %v2607_v47, 0.0 }
 0x32f   :  { %1371 = vadd.xlane.f32.xlu1 %v1370_v55  ;;  %v2613_v12 = vpop.eup %1915 }
 0x330   :  { %1368 = vadd.xlane.f32.xlu0 %v1367_v20  ;;  %v1373_v53 = vsel %vm418_vm1, %v2613_v12, 0.0 }
 0x331   :  { %v2615_v50 = vpop.eup %1917 }
 0x332   :  { %v1376_v19 = vsel %vm418_vm1, %v2615_v50, 0.0 }
 0x333   :  { %1377 = vadd.xlane.f32.xlu1 %v1376_v19  ;;  %v2621_v57 = vpop.eup %1919 }
 0x334   :  { %1374 = vadd.xlane.f32.xlu0 %v1373_v53  ;;  %v1379_v61 = vsel %vm418_vm1, %v2621_v57, 0.0 }
 0x335   :  { %v2623_v58 = vpop.eup %1921 }
 0x336   :  { %v1382_v63 = vsel %vm418_vm1, %v2623_v58, 0.0 }
 0x337   :  { %1383 = vadd.xlane.f32.xlu1 %v1382_v63 }
 0x338   :  { %1380 = vadd.xlane.f32.xlu0 %v1379_v61 }
 0x380   :  { %v1294_v52 = vpop.xlane.xlu1 %1293 }
 0x381   :  { %1923 = vrcp.f32 %v1294_v52 }
 0x384   :  { %v1300_v49 = vpop.xlane.xlu1 %1299 }
 0x385   :  { %1925 = vrcp.f32 %v1300_v49  ;;  %v1291_v25 = vpop.xlane.xlu0 %1290 }
 0x386   :  { %1927 = vrcp.f32 %v1291_v25 }
 0x389   :  { %v1297_v62 = vpop.xlane.xlu0 %1296 }
 0x38a   :  { %1929 = vrcp.f32 %v1297_v62 }
 0x38c   :  { %v1306_v5 = vpop.xlane.xlu1 %1305 }
 0x38d   :  { %1931 = vrcp.f32 %v1306_v5  ;;  %v1303_v10 = vpop.xlane.xlu0 %1302 }
 0x38e   :  { %v1924_v9 = vpop.eup %1923  ;;  %1933 = vrcp.f32 %v1303_v10 }
 0x38f   :  { %v1388_v60 = vmul.f32 %v1924_v9, %v2477_v4 }
 0x390   :  { %v1312_v11 = vpop.xlane.xlu1 %1311 }
 0x391   :  { %1451 = vst.msk [vmem:[%s2791_s2 + $0x8] sm:$0xff] %vm1449_vm2, %v1388_v60  ;;  %1935 = vrcp.f32 %v1312_v11  ;;  %v1309_v59 = vpop.xlane.xlu0 %1308 }
 0x392   :  { %v1926_v31 = vpop.eup %1925  ;;  %1937 = vrcp.f32 %v1309_v59 }
 0x393   :  { %v1928_v6 = vpop.eup %1927  ;;  %v1392_v21 = vmul.f32 %v1926_v31, %v2483_v15 }
 0x394   :  { %v1386_v22 = vmul.f32 %v1928_v6, %v2485_v1  ;;  %v1318_v17 = vpop.xlane.xlu1 %1317 }
 0x395   :  { %1453 = vst.msk [vmem:[%s2791_s2 + $0x18] sm:$0xff] %vm1449_vm2, %v1392_v21  ;;  %1939 = vrcp.f32 %v1318_v17  ;;  %v1315_v4 = vpop.xlane.xlu0 %1314 }
 0x396   :  { %1450 = vst.msk [vmem:[%s2791_s2] sm:$0xff] %vm1449_vm2, %v1386_v22  ;;  %1941 = vrcp.f32 %v1315_v4 }
 0x397   :  { %v1930_v8 = vpop.eup %1929 }
 0x398   :  { %v1390_v23 = vmul.f32 %v1930_v8, %v2493_v30  ;;  %v1324_v15 = vpop.xlane.xlu1 %1323 }
 0x399   :  { %1943 = vrcp.f32 %v1324_v15  ;;  %v1321_v1 = vpop.xlane.xlu0 %1320 }
 0x39a   :  { %v1932_v28 = vpop.eup %1931  ;;  %1452 = vst.msk [vmem:[%s2791_s2 + $0x10] sm:$0xff] %vm1449_vm2, %v1390_v23  ;;  %1945 = vrcp.f32 %v1321_v1 }
 0x39b   :  { %v1934_v37 = vpop.eup %1933  ;;  %v1396_v16 = vmul.f32 %v1932_v28, %v2501_v42 }
 0x39c   :  { %v1394_v34 = vmul.f32 %v1934_v37, %v2498_v39  ;;  %v1330_v14 = vpop.xlane.xlu1 %1329 }
 0x39d   :  { %1455 = vst.msk [vmem:[%s2791_s2 + $0x28] sm:$0xff] %vm1449_vm2, %v1396_v16  ;;  %1947 = vrcp.f32 %v1330_v14  ;;  %v1327_v30 = vpop.xlane.xlu0 %1326 }
 0x39e   :  { %v1936_v27 = vpop.eup %1935  ;;  %1454 = vst.msk [vmem:[%s2791_s2 + $0x20] sm:$0xff] %vm1449_vm2, %v1394_v34  ;;  %1949 = vrcp.f32 %v1327_v30 }
 0x39f   :  { %v1938_v35 = vpop.eup %1937  ;;  %v1400_v42 = vmul.f32 %v1936_v27, %v2511_v48 }
 0x3a0   :  { %v1398_v39 = vmul.f32 %v1938_v35, %v2508_v51  ;;  %v1336_v24 = vpop.xlane.xlu1 %1335 }
 0x3a1   :  { %1457 = vst.msk [vmem:[%s2791_s2 + $0x38] sm:$0xff] %vm1449_vm2, %v1400_v42  ;;  %1951 = vrcp.f32 %v1336_v24  ;;  %v1333_v44 = vpop.xlane.xlu0 %1332 }
 0x3a2   :  { %v1940_v55 = vpop.eup %1939  ;;  %1456 = vst.msk [vmem:[%s2791_s2 + $0x30] sm:$0xff] %vm1449_vm2, %v1398_v39  ;;  %1953 = vrcp.f32 %v1333_v44 }
 0x3a3   :  { %v1942_v20 = vpop.eup %1941  ;;  %v1404_v48 = vmul.f32 %v1940_v55, %v2521_v54 }
 0x3a4   :  { %v1402_v51 = vmul.f32 %v1942_v20, %v2518_v0  ;;  %v1342_v19 = vpop.xlane.xlu1 %1341 }
 0x3a5   :  { %1459 = vst.msk [vmem:[%s2791_s2 + $0x48] sm:$0xff] %vm1449_vm2, %v1404_v48  ;;  %1955 = vrcp.f32 %v1342_v19  ;;  %v1339_v53 = vpop.xlane.xlu0 %1338 }
 0x3a6   :  { %v1944_v63 = vpop.eup %1943  ;;  %1458 = vst.msk [vmem:[%s2791_s2 + $0x40] sm:$0xff] %vm1449_vm2, %v1402_v51  ;;  %1957 = vrcp.f32 %v1339_v53 }
 0x3a7   :  { %v1946_v61 = vpop.eup %1945  ;;  %v1408_v54 = vmul.f32 %v1944_v63, %v2531_v18 }
 0x3a8   :  { %v1406_v0 = vmul.f32 %v1946_v61, %v2528_v2  ;;  %v1348_v52 = vpop.xlane.xlu1 %1347 }
 0x3a9   :  { %1461 = vst.msk [vmem:[%s2791_s2 + $0x58] sm:$0xff] %vm1449_vm2, %v1408_v54  ;;  %1959 = vrcp.f32 %v1348_v52  ;;  %v1345_v49 = vpop.xlane.xlu0 %1344 }
 0x3aa   :  { %v1948_v25 = vpop.eup %1947  ;;  %1460 = vst.msk [vmem:[%s2791_s2 + $0x50] sm:$0xff] %vm1449_vm2, %v1406_v0  ;;  %1961 = vrcp.f32 %v1345_v49 }
 0x3ab   :  { %v1950_v62 = vpop.eup %1949  ;;  %v1412_v18 = vmul.f32 %v1948_v25, %v2541_v33 }
 0x3ac   :  { %v1410_v2 = vmul.f32 %v1950_v62, %v2538_v29  ;;  %v1354_v5 = vpop.xlane.xlu1 %1353 }
 0x3ad   :  { %1463 = vst.msk [vmem:[%s2791_s2 + $0x68] sm:$0xff] %vm1449_vm2, %v1412_v18  ;;  %1963 = vrcp.f32 %v1354_v5  ;;  %v1351_v10 = vpop.xlane.xlu0 %1350 }
 0x3ae   :  { %v1952_v9 = vpop.eup %1951  ;;  %1462 = vst.msk [vmem:[%s2791_s2 + $0x60] sm:$0xff] %vm1449_vm2, %v1410_v2  ;;  %1965 = vrcp.f32 %v1351_v10 }
 0x3af   :  { %v1954_v60 = vpop.eup %1953  ;;  %v1416_v33 = vmul.f32 %v1952_v9, %v2551_v43 }
 0x3b0   :  { %v1414_v29 = vmul.f32 %v1954_v60, %v2548_v40  ;;  %v1360_v11 = vpop.xlane.xlu1 %1359 }
 0x3b1   :  { %1465 = vst.msk [vmem:[%s2791_s2 + $0x78] sm:$0xff] %vm1449_vm2, %v1416_v33  ;;  %1967 = vrcp.f32 %v1360_v11  ;;  %v1357_v59 = vpop.xlane.xlu0 %1356 }
 0x3b2   :  { %v1956_v31 = vpop.eup %1955  ;;  %1464 = vst.msk [vmem:[%s2791_s2 + $0x70] sm:$0xff] %vm1449_vm2, %v1414_v29  ;;  %1969 = vrcp.f32 %v1357_v59 }
 0x3b3   :  { %v1958_v6 = vpop.eup %1957  ;;  %v1420_v43 = vmul.f32 %v1956_v31, %v2561_v26 }
 0x3b4   :  { %v1418_v40 = vmul.f32 %v1958_v6, %v2558_v56  ;;  %v1366_v21 = vpop.xlane.xlu1 %1365 }
 0x3b5   :  { %1467 = vst.msk [vmem:[%s2791_s2 + $0x88] sm:$0xff] %vm1449_vm2, %v1420_v43  ;;  %1971 = vrcp.f32 %v1366_v21  ;;  %v1363_v22 = vpop.xlane.xlu0 %1362 }
 0x3b6   :  { %v1960_v17 = vpop.eup %1959  ;;  %1466 = vst.msk [vmem:[%s2791_s2 + $0x80] sm:$0xff] %vm1449_vm2, %v1418_v40  ;;  %1973 = vrcp.f32 %v1363_v22 }
 0x3b7   :  { %v1962_v4 = vpop.eup %1961  ;;  %v1424_v26 = vmul.f32 %v1960_v17, %v2571_v32 }
 0x3b8   :  { %v1422_v56 = vmul.f32 %v1962_v4, %v2568_v3  ;;  %v1372_v8 = vpop.xlane.xlu1 %1371 }
 0x3b9   :  { %1469 = vst.msk [vmem:[%s2791_s2 + $0x98] sm:$0xff] %vm1449_vm2, %v1424_v26  ;;  %1975 = vrcp.f32 %v1372_v8  ;;  %v1369_v23 = vpop.xlane.xlu0 %1368 }
 0x3ba   :  { %v1964_v15 = vpop.eup %1963  ;;  %1468 = vst.msk [vmem:[%s2791_s2 + $0x90] sm:$0xff] %vm1449_vm2, %v1422_v56  ;;  %1977 = vrcp.f32 %v1369_v23 }
 0x3bb   :  { %v1966_v1 = vpop.eup %1965  ;;  %v1428_v32 = vmul.f32 %v1964_v15, %v2581_v38 }
 0x3bc   :  { %v1426_v3 = vmul.f32 %v1966_v1, %v2578_v13  ;;  %v1378_v28 = vpop.xlane.xlu1 %1377 }
 0x3bd   :  { %1471 = vst.msk [vmem:[%s2791_s2 + $0xa8] sm:$0xff] %vm1449_vm2, %v1428_v32  ;;  %1979 = vrcp.f32 %v1378_v28  ;;  %v1375_v37 = vpop.xlane.xlu0 %1374 }
 0x3be   :  { %v1968_v16 = vpop.eup %1967  ;;  %1470 = vst.msk [vmem:[%s2791_s2 + $0xa0] sm:$0xff] %vm1449_vm2, %v1426_v3  ;;  %1981 = vrcp.f32 %v1375_v37 }
 0x3bf   :  { %v1970_v34 = vpop.eup %1969  ;;  %v1432_v38 = vmul.f32 %v1968_v16, %v2591_v45 }
 0x3c0   :  { %v1430_v13 = vmul.f32 %v1970_v34, %v2588_v7  ;;  %v1384_v14 = vpop.xlane.xlu1 %1383 }
 0x3c1   :  { %1473 = vst.msk [vmem:[%s2791_s2 + $0xb8] sm:$0xff] %vm1449_vm2, %v1432_v38  ;;  %1983 = vrcp.f32 %v1384_v14  ;;  %v1381_v30 = vpop.xlane.xlu0 %1380 }
 0x3c2   :  { %v1972_v27 = vpop.eup %1971  ;;  %1472 = vst.msk [vmem:[%s2791_s2 + $0xb0] sm:$0xff] %vm1449_vm2, %v1430_v13  ;;  %1985 = vrcp.f32 %v1381_v30 }
 0x3c3   :  { %v1974_v35 = vpop.eup %1973  ;;  %v1436_v45 = vmul.f32 %v1972_v27, %v2599_v46 }
 0x3c4   :  { %v1434_v7 = vmul.f32 %v1974_v35, %v2597_v36 }
 0x3c5   :  { %1475 = vst.msk [vmem:[%s2791_s2 + $0xc8] sm:$0xff] %vm1449_vm2, %v1436_v45 }
 0x3c6   :  { %v1976_v42 = vpop.eup %1975  ;;  %1474 = vst.msk [vmem:[%s2791_s2 + $0xc0] sm:$0xff] %vm1449_vm2, %v1434_v7 }
 0x3c7   :  { %v1978_v39 = vpop.eup %1977  ;;  %v1440_v24 = vmul.f32 %v1976_v42, %v2607_v47 }
 0x3c8   :  { %v1438_v44 = vmul.f32 %v1978_v39, %v2605_v41 }
 0x3c9   :  { %1477 = vst.msk [vmem:[%s2791_s2 + $0xd8] sm:$0xff] %vm1449_vm2, %v1440_v24 }
 0x3ca   :  { %v1980_v36 = vpop.eup %1979  ;;  %1476 = vst.msk [vmem:[%s2791_s2 + $0xd0] sm:$0xff] %vm1449_vm2, %v1438_v44 }
 0x3cb   :  { %v1982_v46 = vpop.eup %1981  ;;  %v1444_v55 = vmul.f32 %v1980_v36, %v2615_v50 }
 0x3cc   :  { %v1442_v20 = vmul.f32 %v1982_v46, %v2613_v12 }
 0x3cd   :  { %1479 = vst.msk [vmem:[%s2791_s2 + $0xe8] sm:$0xff] %vm1449_vm2, %v1444_v55 }
 0x3ce   :  { %v1984_v41 = vpop.eup %1983  ;;  %1478 = vst.msk [vmem:[%s2791_s2 + $0xe0] sm:$0xff] %vm1449_vm2, %v1442_v20 }
 0x3cf   :  { %v1986_v47 = vpop.eup %1985  ;;  %v1448_v48 = vmul.f32 %v1984_v41, %v2623_v58 }
 0x3d0   :  { %v1446_v51 = vmul.f32 %v1986_v47, %v2621_v57 }
 0x3d1   :  { %1481 = vst.msk [vmem:[%s2791_s2 + $0xf8] sm:$0xff] %vm1449_vm2, %v1448_v48 }
 0x3d2   :  { %1480 = vst.msk [vmem:[%s2791_s2 + $0xf0] sm:$0xff] %vm1449_vm2, %v1446_v51 }

</bundles_post_ra>
